<compile_context>
chip_gen: v6e
topology: v6e:2x2x1
jax: 0.10.0
libtpu: 0.0.40
codegen_flags: <defaults>
</compile_context>

<pallas_src>
import functools

import jax
import jax.numpy as jnp
from jax.experimental import pallas as pl
from jax.experimental.pallas import tpu as pltpu

NEG_SLOPE = 0.01   # nn.LeakyReLU default
BN_EPS = 1e-5      # nn.BatchNorm1d default


def _leaky_relu(x):
    return jnp.where(x >= 0, x, NEG_SLOPE * x)


def _bn2_fold(sum_h, sumsq_h, g2, be2, w2, b2, batch):
    """Fold training-mode BatchNorm1d(H) (biased batch stats) into the (H -> 1) proj."""
    inv_n = 1.0 / batch
    mean2 = sum_h * inv_n
    # TODO(synk): Welford / shifted accumulation if E[h^2]-E[h]^2 cancellation matters.
    var2 = jnp.maximum(sumsq_h * inv_n - mean2 * mean2, 0.0)
    scale2 = g2 * jax.lax.rsqrt(var2 + BN_EPS)
    shift2 = be2 - mean2 * scale2
    w2f = w2 * scale2
    b2f = jnp.sum(shift2 * w2, axis=-1, keepdims=True) + b2
    return w2f, b2f


# --------------------------- single-pass kernel (n_tiles == 1) ---------------------------

def _single_pass_kernel(x_ref, scale1_ref, w1_ref, b1f_ref,
                        g2_ref, be2_ref, w2_ref, b2_ref, o_ref, *, batch):
    # BN1: scale applied to the tile here (VPU, f32); shift pre-folded into b1f.
    xs = x_ref[...] * scale1_ref[...]
    h = jnp.dot(xs.astype(jnp.bfloat16), w1_ref[...],
                preferred_element_type=jnp.float32) + b1f_ref[...]
    h = _leaky_relu(h)
    sum_h = jnp.sum(h, axis=0, keepdims=True)
    sumsq_h = jnp.sum(h * h, axis=0, keepdims=True)
    w2f, b2f = _bn2_fold(sum_h, sumsq_h, g2_ref[...], be2_ref[...],
                         w2_ref[...], b2_ref[...], batch)
    # Final (H -> 1) projection on the VPU: broadcast-mul + cross-lane reduce.
    y = jnp.sum(h * w2f, axis=-1, keepdims=True) + b2f
    o_ref[...] = _leaky_relu(y).astype(o_ref.dtype)


# --------------------------- two-phase kernel (multi-tile batch) -------------------------

def _two_phase_kernel(x_ref, scale1_ref, w1_hbm_ref, b1f_ref,
                      g2_ref, be2_ref, w2_ref, b2_ref,
                      o_ref,
                      w1_vmem, w1_sem, sum_ref, sumsq_ref, w2f_ref, b2f_ref,
                      *h1_stash, batch, tm, stash):
    phase = pl.program_id(0)   # 0: accumulate BN2 stats, 1: fold + apply
    tile = pl.program_id(1)    # batch-tile index

    @pl.when((phase == 0) & (tile == 0))
    def _init_once():
        # One-time, single-buffered copy of the grid-invariant bf16 weight.
        cp = pltpu.make_async_copy(w1_hbm_ref, w1_vmem, w1_sem)
        cp.start()
        cp.wait()
        sum_ref[...] = jnp.zeros_like(sum_ref)
        sumsq_ref[...] = jnp.zeros_like(sumsq_ref)

    def hidden():
        xs = x_ref[...] * scale1_ref[...]               # BN1 scale on the VPU (f32)
        h = jnp.dot(xs.astype(jnp.bfloat16), w1_vmem[...],
                    preferred_element_type=jnp.float32) + b1f_ref[...]
        return _leaky_relu(h)

    @pl.when(phase == 0)
    def _stats_phase():
        h = hidden()
        if stash:
            h1_stash[0][tile] = h.astype(jnp.bfloat16)   # cache h1 for phase 1
        # Mask padded rows of a partial last tile so full-batch stats stay exact.
        row = jax.lax.broadcasted_iota(jnp.int32, (tm, 1), 0) + tile * tm
        hm = jnp.where(row < batch, h, 0.0)
        sum_ref[...] += jnp.sum(hm, axis=0, keepdims=True)
        sumsq_ref[...] += jnp.sum(hm * hm, axis=0, keepdims=True)
        # No o_ref write here: the phase-1 revisit of this block is the only real store.

    @pl.when(phase == 1)
    def _apply_phase():
        @pl.when(tile == 0)
        def _fold_once():
            w2f, b2f = _bn2_fold(sum_ref[...], sumsq_ref[...], g2_ref[...],
                                 be2_ref[...], w2_ref[...], b2_ref[...], batch)
            w2f_ref[...] = w2f
            b2f_ref[...] = b2f
        if stash:
            h = h1_stash[0][tile].astype(jnp.float32)
        else:
            # TODO(synk): spill h1 as bf16 to HBM in phase 0 instead of recomputing when
            # the VMEM stash does not fit (very large batches).
            h = hidden()
        y = jnp.sum(h * w2f_ref[...], axis=-1, keepdims=True) + b2f_ref[...]
        o_ref[...] = _leaky_relu(y).astype(o_ref.dtype)


# ------------------------------------ planning / wrapper ---------------------------------

def _vmem_capacity_bytes():
    try:
        return int(pltpu.get_tpu_info().vmem_capacity_bytes)
    except Exception:
        return 64 * 1024 * 1024            # conservative: v7x physical VMEM per core


def _plan(batch, d, h, max_tile_rows=None, force_no_stash=False):
    """Returns (tm, single_pass, stash_h1, vmem_limit_bytes)."""
    cap = _vmem_capacity_bytes()
    vmem_limit = min((cap * 3) // 4, 100 * 1024 * 1024)    # 48 MiB on v7x, 96 MiB v5e/v6e
    w1_bytes = d * h * 2                                    # single-buffered bf16 W1 copy
    small = 2 * 4 * (2 * d + 6 * h + 8) + 4 * (3 * h + 4)  # small param blocks + stats
    headroom = 2 * 1024 * 1024                              # Mosaic internal scratch, slack
    avail = vmem_limit - w1_bytes - small - headroom
    # TODO(synk): for very large D*H, add an H grid axis tiling W1 in 256-lane chunks.
    row_bytes = 2 * d * 4 + 2 * 4                           # dbl-buffered x row + out row
    tm_cap = max(8, avail // (2 * max(row_bytes, 1)))       # reserve ~half of avail for stash
    tm = min(1024, batch, tm_cap)
    if max_tile_rows is not None:
        tm = min(tm, max_tile_rows)
    if tm >= batch:
        return batch, True, False, vmem_limit               # whole batch in one block
    tm = max(8, (tm // 8) * 8)
    n_tiles = pl.cdiv(batch, tm)
    stash_bytes = n_tiles * tm * h * 2                       # bf16 h1 stash
    stash = (not force_no_stash) and (stash_bytes + tm * row_bytes <= avail)
    return tm, False, stash, vmem_limit


def prepare_params(params):
    """One-time preprocessing: transpose W1, pre-cast it to bf16, lane-align vectors."""
    g1, be1, w1, b1, g2, be2, w2, b2 = params
    D = g1.shape[0]
    H = g2.shape[0]
    w1t = jnp.asarray(w1).T                    # (D, H), f32 (used for the bias fold)
    return dict(
        g1=g1.reshape(1, D), be1=be1.reshape(1, D),
        w1t=w1t,
        w1_bf16=w1t.astype(jnp.bfloat16),      # MXU operand, cast once (not per call)
        b1=b1.reshape(1, H),
        g2=g2.reshape(1, H), be2=be2.reshape(1, H),
        w2=w2.reshape(1, H),                   # final projection as a row (VPU reduce)
        b2=b2.reshape(1, 1),
    )


def apt_predictor(x, prep, *, max_tile_rows=None, force_no_stash=False):
    """x: (B, input_dim) float32 -> (B, 1) float32 (training-mode batch-norm semantics)."""
    x = x.astype(jnp.float32)
    B, D = x.shape
    H = prep["w1_bf16"].shape[1]

    # BN1 statistics in one fused pass over x (biased, training mode), done in XLA.
    m1 = jnp.mean(x, axis=0, keepdims=True)
    ex2 = jnp.mean(x * x, axis=0, keepdims=True)
    var1 = jnp.maximum(ex2 - m1 * m1, 0.0)
    scale1 = prep["g1"] * jax.lax.rsqrt(var1 + BN_EPS)      # (1, D)
    shift1 = prep["be1"] - m1 * scale1                      # (1, D)
    # Only the BN1 shift is folded ahead of time (into the Linear1 bias); the (1, D)
    # scale is applied to the x tile inside the kernel, so no per-call (D, H) rewrite.
    b1f = shift1 @ prep["w1t"] + prep["b1"]                 # (1, H), f32

    tm, single_pass, stash, vmem_limit = _plan(B, D, H, max_tile_rows, force_no_stash)
    args = (x, scale1, prep["w1_bf16"], b1f, prep["g2"], prep["be2"], prep["w2"], prep["b2"])
    out_shape = jax.ShapeDtypeStruct((B, 1), jnp.float32)

    if single_pass:
        return pl.pallas_call(
            functools.partial(_single_pass_kernel, batch=B),
            out_shape=out_shape,
            grid_spec=pltpu.PrefetchScalarGridSpec(
                num_scalar_prefetch=0,
                grid=(1,),
                in_specs=[
                    pl.BlockSpec((B, D), lambda i: (0, 0)),   # x (whole batch)
                    pl.BlockSpec((1, D), lambda i: (0, 0)),   # BN1 scale
                    pl.BlockSpec((D, H), lambda i: (0, 0)),   # W1 (bf16)
                    pl.BlockSpec((1, H), lambda i: (0, 0)),   # folded Linear1 bias
                    pl.BlockSpec((1, H), lambda i: (0, 0)),   # gamma2
                    pl.BlockSpec((1, H), lambda i: (0, 0)),   # beta2
                    pl.BlockSpec((1, H), lambda i: (0, 0)),   # w2 row
                    pl.BlockSpec((1, 1), lambda i: (0, 0)),   # b2
                ],
                out_specs=pl.BlockSpec((B, 1), lambda i: (0, 0)),
            ),
            compiler_params=pltpu.CompilerParams(
                dimension_semantics=("arbitrary",),
                vmem_limit_bytes=vmem_limit,
            ),
        )(*args)

    n_tiles = pl.cdiv(B, tm)
    scratch_shapes = [
        pltpu.VMEM((D, H), jnp.bfloat16),     # single-buffered W1 copy
        pltpu.SemaphoreType.DMA(()),          # its DMA semaphore
        pltpu.VMEM((1, H), jnp.float32),      # sum(h1)
        pltpu.VMEM((1, H), jnp.float32),      # sum(h1^2)
        pltpu.VMEM((1, H), jnp.float32),      # BN2-folded w2
        pltpu.VMEM((1, 1), jnp.float32),      # BN2-folded b2
    ]
    if stash:
        scratch_shapes.append(pltpu.VMEM((n_tiles, tm, H), jnp.bfloat16))

    kernel = functools.partial(_two_phase_kernel, batch=B, tm=tm, stash=stash)
    return pl.pallas_call(
        kernel,
        out_shape=out_shape,
        grid_spec=pltpu.PrefetchScalarGridSpec(
            num_scalar_prefetch=0,
            grid=(2, n_tiles),                                # (phase, batch tile)
            in_specs=[
                pl.BlockSpec((tm, D), lambda p, i: (i, 0)),   # x batch tile
                pl.BlockSpec((1, D), lambda p, i: (0, 0)),    # BN1 scale row
                pl.BlockSpec(memory_space=pl.ANY),            # W1 stays in HBM; copied once
                pl.BlockSpec((1, H), lambda p, i: (0, 0)),    # folded Linear1 bias
                pl.BlockSpec((1, H), lambda p, i: (0, 0)),    # gamma2
                pl.BlockSpec((1, H), lambda p, i: (0, 0)),    # beta2
                pl.BlockSpec((1, H), lambda p, i: (0, 0)),    # w2 row
                pl.BlockSpec((1, 1), lambda p, i: (0, 0)),    # b2
            ],
            out_specs=pl.BlockSpec((tm, 1), lambda p, i: (i, 0)),
            scratch_shapes=scratch_shapes,
        ),
        compiler_params=pltpu.CompilerParams(
            # Both axes stay "arbitrary": phases must run in order and the batch axis
            # accumulates full-batch BN2 stats into shared VMEM scratch.
            # TODO(synk): on v7x, shard the tile axis across both TensorCores with
            # per-core partial sums + a cross-core combine before the BN2 fold.
            dimension_semantics=("arbitrary", "arbitrary"),
            vmem_limit_bytes=vmem_limit,
        ),
    )(*args)


# ----------------------------------- test scaffolding ------------------------------------

def init_params(key, input_dim):
    """Deterministic synthetic parameters matching the module's __init__ shapes."""
    D, H = input_dim, input_dim // 2
    ks = jax.random.split(key, 8)
    g1 = 1.0 + 0.1 * jax.random.normal(ks[0], (D,), jnp.float32)
    be1 = 0.1 * jax.random.normal(ks[1], (D,), jnp.float32)
    bound1 = 1.0 / jnp.sqrt(D)
    w1 = jax.random.uniform(ks[2], (H, D), jnp.float32, -bound1, bound1)
    b1 = jax.random.uniform(ks[3], (H,), jnp.float32, -bound1, bound1)
    g2 = 1.0 + 0.1 * jax.random.normal(ks[4], (H,), jnp.float32)
    be2 = 0.1 * jax.random.normal(ks[5], (H,), jnp.float32)
    bound2 = 1.0 / jnp.sqrt(H)
    w2 = jax.random.uniform(ks[6], (1, H), jnp.float32, -bound2, bound2)
    b2 = jax.random.uniform(ks[7], (1,), jnp.float32, -bound2, bound2)
    return (g1, be1, w1, b1, g2, be2, w2, b2)


def reference(x, params):
    """Pure-JAX f32 reference of the same forward pass."""
    g1, be1, w1, b1, g2, be2, w2, b2 = params

    def bn(x, g, b):
        m = jnp.mean(x, axis=0, keepdims=True)
        v = jnp.mean((x - m) ** 2, axis=0, keepdims=True)
        return (x - m) / jnp.sqrt(v + BN_EPS) * g + b

    h = bn(x, g1, be1)
    h = _leaky_relu(h @ w1.T + b1)
    h = bn(h, g2, be2)
    h = _leaky_relu(h @ w2.T + b2)
    return h


if __name__ == "__main__":
    key = jax.random.PRNGKey(0)
    k_x1, k_x2, k_p = jax.random.split(key, 3)

    INPUT_DIM = 32
    params = init_params(k_p, INPUT_DIM)
    prep = prepare_params(params)          # one-time transpose / bf16 cast / reshapes

    run = jax.jit(apt_predictor, static_argnames=("max_tile_rows", "force_no_stash"))

    # Tolerance is relaxed vs an f32 reference because the MXU operands are bf16
    # (accumulation and all BN math stay f32).
    ATOL = RTOL = 5e-2

    # 1) Small batch -> single-pass kernel (grid=(1,)).
    B1 = 8
    x1 = jax.random.normal(k_x1, (B1, INPUT_DIM), jnp.float32)
    out1 = jax.block_until_ready(run(x1, prep))
    ref1 = reference(x1, params)
    assert out1.shape == (B1, 1), out1.shape
    assert jnp.allclose(out1, ref1, atol=ATOL, rtol=RTOL), (out1, ref1)

    # 2) Multi-tile batch with a partial last tile -> two-phase kernel + VMEM h1 stash.
    B2 = 40
    x2 = jax.random.normal(k_x2, (B2, INPUT_DIM), jnp.float32)
    out2 = jax.block_until_ready(run(x2, prep, max_tile_rows=16))
    ref2 = reference(x2, params)
    assert out2.shape == (B2, 1), out2.shape
    assert jnp.allclose(out2, ref2, atol=ATOL, rtol=RTOL), (out2, ref2)

    # 3) Same shapes with the stash disabled -> exercises the recompute fallback path.
    out3 = jax.block_until_ready(run(x2, prep, max_tile_rows=16, force_no_stash=True))
    assert jnp.allclose(out3, ref2, atol=ATOL, rtol=RTOL), (out3, ref2)

    print("KERNEL_OK")
</pallas_src>

<mosaic_0001>
module attributes {stable_mosaic.version = 11 : i64} {
  func.func @_single_pass_kernel(%arg0: i32, %arg1: memref<8x32xf32, #tpu.memory_space<vmem>>, %arg2: memref<1x32xf32, #tpu.memory_space<vmem>>, %arg3: memref<32x16xbf16, #tpu.memory_space<vmem>>, %arg4: memref<1x16xf32, #tpu.memory_space<vmem>>, %arg5: memref<1x16xf32, #tpu.memory_space<vmem>>, %arg6: memref<1x16xf32, #tpu.memory_space<vmem>>, %arg7: memref<1x16xf32, #tpu.memory_space<vmem>>, %arg8: memref<1x1xf32, #tpu.memory_space<vmem>>, %arg9: memref<8x1xf32, #tpu.memory_space<vmem>>) attributes {dimension_semantics = [#tpu.dimension_semantics<arbitrary>], iteration_bounds = array<i64: 1>, scalar_prefetch = 0 : i64, scratch_operands = 0 : i64, tpu.core_type = #tpu.core_type<tc>, window_params = [{pipeline_mode = #tpu.pipeline_mode<synchronous>, transform_indices = @transform_0, window_bounds = array<i64: 8, 32>}, {pipeline_mode = #tpu.pipeline_mode<synchronous>, transform_indices = @transform_1, window_bounds = array<i64: 1, 32>}, {pipeline_mode = #tpu.pipeline_mode<synchronous>, transform_indices = @transform_2, window_bounds = array<i64: 32, 16>}, {pipeline_mode = #tpu.pipeline_mode<synchronous>, transform_indices = @transform_3, window_bounds = array<i64: 1, 16>}, {pipeline_mode = #tpu.pipeline_mode<synchronous>, transform_indices = @transform_4, window_bounds = array<i64: 1, 16>}, {pipeline_mode = #tpu.pipeline_mode<synchronous>, transform_indices = @transform_5, window_bounds = array<i64: 1, 16>}, {pipeline_mode = #tpu.pipeline_mode<synchronous>, transform_indices = @transform_6, window_bounds = array<i64: 1, 16>}, {pipeline_mode = #tpu.pipeline_mode<synchronous>, transform_indices = @transform_7, window_bounds = array<i64: 1, 1>}, {pipeline_mode = #tpu.pipeline_mode<synchronous>, transform_indices = @transform_8, window_bounds = array<i64: 8, 1>}]} {
    %c0 = arith.constant 0 : index
    %c0_0 = arith.constant 0 : index
    %0 = vector.load %arg1[%c0, %c0_0] : memref<8x32xf32, #tpu.memory_space<vmem>>, vector<8x32xf32>
    %c0_1 = arith.constant 0 : index
    %c0_2 = arith.constant 0 : index
    %1 = vector.load %arg2[%c0_1, %c0_2] : memref<1x32xf32, #tpu.memory_space<vmem>>, vector<1x32xf32>
    %2 = vector.broadcast %1 : vector<1x32xf32> to vector<8x32xf32>
    %3 = arith.mulf %0, %2 : vector<8x32xf32>
    %4 = arith.truncf %3 : vector<8x32xf32> to vector<8x32xbf16>
    %c0_3 = arith.constant 0 : index
    %c0_4 = arith.constant 0 : index
    %5 = vector.load %arg3[%c0_3, %c0_4] : memref<32x16xbf16, #tpu.memory_space<vmem>>, vector<32x16xbf16>
    %cst = arith.constant dense<0.000000e+00> : vector<8x16xf32>
    %6 = tpu.matmul %4, %5, %cst {dimension_numbers = #tpu.dot_dimension_numbers<[1], [0], [0], [1], [0, 0, 1, 1], [], []>} : vector<8x32xbf16>, vector<32x16xbf16>, vector<8x16xf32> -> vector<8x16xf32>
    %c0_5 = arith.constant 0 : index
    %c0_6 = arith.constant 0 : index
    %7 = vector.load %arg4[%c0_5, %c0_6] : memref<1x16xf32, #tpu.memory_space<vmem>>, vector<1x16xf32>
    %8 = vector.broadcast %7 : vector<1x16xf32> to vector<8x16xf32>
    %9 = arith.addf %6, %8 : vector<8x16xf32>
    %cst_7 = arith.constant 0.000000e+00 : f32
    %10 = vector.broadcast %cst_7 : f32 to vector<8x16xf32>
    %11 = arith.cmpf oge, %9, %10 : vector<8x16xf32>
    %cst_8 = arith.constant 0.00999999977 : f32
    %12 = vector.broadcast %cst_8 : f32 to vector<8x16xf32>
    %13 = arith.mulf %12, %9 : vector<8x16xf32>
    %14 = arith.select %11, %9, %13 : vector<8x16xi1>, vector<8x16xf32>
    %cst_9 = arith.constant dense<0.000000e+00> : vector<16xf32>
    %15 = vector.multi_reduction <add>, %14, %cst_9 [0] : vector<8x16xf32> to vector<16xf32>
    %16 = vector.shape_cast %15 : vector<16xf32> to vector<1x16xf32>
    %17 = arith.mulf %14, %14 : vector<8x16xf32>
    %cst_10 = arith.constant dense<0.000000e+00> : vector<16xf32>
    %18 = vector.multi_reduction <add>, %17, %cst_10 [0] : vector<8x16xf32> to vector<16xf32>
    %19 = vector.shape_cast %18 : vector<16xf32> to vector<1x16xf32>
    %c0_11 = arith.constant 0 : index
    %c0_12 = arith.constant 0 : index
    %20 = vector.load %arg5[%c0_11, %c0_12] : memref<1x16xf32, #tpu.memory_space<vmem>>, vector<1x16xf32>
    %c0_13 = arith.constant 0 : index
    %c0_14 = arith.constant 0 : index
    %21 = vector.load %arg6[%c0_13, %c0_14] : memref<1x16xf32, #tpu.memory_space<vmem>>, vector<1x16xf32>
    %c0_15 = arith.constant 0 : index
    %c0_16 = arith.constant 0 : index
    %22 = vector.load %arg7[%c0_15, %c0_16] : memref<1x16xf32, #tpu.memory_space<vmem>>, vector<1x16xf32>
    %c0_17 = arith.constant 0 : index
    %c0_18 = arith.constant 0 : index
    %23 = vector.load %arg8[%c0_17, %c0_18] : memref<1x1xf32, #tpu.memory_space<vmem>>, vector<1x1xf32>
    %cst_19 = arith.constant 1.250000e-01 : f32
    %24 = vector.broadcast %cst_19 : f32 to vector<1x16xf32>
    %25 = arith.mulf %16, %24 : vector<1x16xf32>
    %cst_20 = arith.constant 1.250000e-01 : f32
    %26 = vector.broadcast %cst_20 : f32 to vector<1x16xf32>
    %27 = arith.mulf %19, %26 : vector<1x16xf32>
    %28 = arith.mulf %25, %25 : vector<1x16xf32>
    %29 = arith.subf %27, %28 : vector<1x16xf32>
    %cst_21 = arith.constant 0.000000e+00 : f32
    %30 = vector.broadcast %cst_21 : f32 to vector<1x16xf32>
    %31 = arith.maximumf %29, %30 : vector<1x16xf32>
    %cst_22 = arith.constant 9.99999974E-6 : f32
    %32 = vector.broadcast %cst_22 : f32 to vector<1x16xf32>
    %33 = arith.addf %31, %32 : vector<1x16xf32>
    %34 = math.rsqrt %33 : vector<1x16xf32>
    %35 = arith.mulf %20, %34 : vector<1x16xf32>
    %36 = arith.mulf %25, %35 : vector<1x16xf32>
    %37 = arith.subf %21, %36 : vector<1x16xf32>
    %38 = arith.mulf %22, %35 : vector<1x16xf32>
    %39 = arith.mulf %37, %22 : vector<1x16xf32>
    %cst_23 = arith.constant dense<0.000000e+00> : vector<1xf32>
    %40 = vector.multi_reduction <add>, %39, %cst_23 [1] : vector<1x16xf32> to vector<1xf32>
    %41 = vector.shape_cast %40 : vector<1xf32> to vector<1x1xf32>
    %42 = arith.addf %41, %23 : vector<1x1xf32>
    %43 = vector.broadcast %38 : vector<1x16xf32> to vector<8x16xf32>
    %44 = arith.mulf %14, %43 : vector<8x16xf32>
    %cst_24 = arith.constant dense<0.000000e+00> : vector<8xf32>
    %45 = vector.multi_reduction <add>, %44, %cst_24 [1] : vector<8x16xf32> to vector<8xf32>
    %46 = vector.shape_cast %45 : vector<8xf32> to vector<8x1xf32>
    %47 = vector.broadcast %42 : vector<1x1xf32> to vector<8x1xf32>
    %48 = arith.addf %46, %47 : vector<8x1xf32>
    %cst_25 = arith.constant 0.000000e+00 : f32
    %49 = vector.broadcast %cst_25 : f32 to vector<8x1xf32>
    %50 = arith.cmpf oge, %48, %49 : vector<8x1xf32>
    %cst_26 = arith.constant 0.00999999977 : f32
    %51 = vector.broadcast %cst_26 : f32 to vector<8x1xf32>
    %52 = arith.mulf %51, %48 : vector<8x1xf32>
    %53 = arith.select %50, %48, %52 : vector<8x1xi1>, vector<8x1xf32>
    %c0_27 = arith.constant 0 : index
    %c0_28 = arith.constant 0 : index
    %54 = vector.load %arg9[%c0_27, %c0_28] : memref<8x1xf32, #tpu.memory_space<vmem>>, vector<8x1xf32>
    tpu.vector_store %arg9[%c0_27, %c0_28], %53 {strides = array<i32>} : memref<8x1xf32, #tpu.memory_space<vmem>>, vector<8x1xf32>,
    return
  }
  func.func @transform_0(%arg0: i32) -> (i32, i32) {
    %c0_i32 = arith.constant 0 : i32
    %c0_i32_0 = arith.constant 0 : i32
    %c0_i32_1 = arith.constant 0 : i32
    return %c0_i32, %c0_i32_0 : i32, i32
  }
  func.func @transform_1(%arg0: i32) -> (i32, i32) {
    %c0_i32 = arith.constant 0 : i32
    %c0_i32_0 = arith.constant 0 : i32
    %c0_i32_1 = arith.constant 0 : i32
    return %c0_i32, %c0_i32_0 : i32, i32
  }
  func.func @transform_2(%arg0: i32) -> (i32, i32) {
    %c0_i32 = arith.constant 0 : i32
    %c0_i32_0 = arith.constant 0 : i32
    %c0_i32_1 = arith.constant 0 : i32
    return %c0_i32, %c0_i32_0 : i32, i32
  }
  func.func @transform_3(%arg0: i32) -> (i32, i32) {
    %c0_i32 = arith.constant 0 : i32
    %c0_i32_0 = arith.constant 0 : i32
    %c0_i32_1 = arith.constant 0 : i32
    return %c0_i32, %c0_i32_0 : i32, i32
  }
  func.func @transform_4(%arg0: i32) -> (i32, i32) {
    %c0_i32 = arith.constant 0 : i32
    %c0_i32_0 = arith.constant 0 : i32
    %c0_i32_1 = arith.constant 0 : i32
    return %c0_i32, %c0_i32_0 : i32, i32
  }
  func.func @transform_5(%arg0: i32) -> (i32, i32) {
    %c0_i32 = arith.constant 0 : i32
    %c0_i32_0 = arith.constant 0 : i32
    %c0_i32_1 = arith.constant 0 : i32
    return %c0_i32, %c0_i32_0 : i32, i32
  }
  func.func @transform_6(%arg0: i32) -> (i32, i32) {
    %c0_i32 = arith.constant 0 : i32
    %c0_i32_0 = arith.constant 0 : i32
    %c0_i32_1 = arith.constant 0 : i32
    return %c0_i32, %c0_i32_0 : i32, i32
  }
  func.func @transform_7(%arg0: i32) -> (i32, i32) {
    %c0_i32 = arith.constant 0 : i32
    %c0_i32_0 = arith.constant 0 : i32
    %c0_i32_1 = arith.constant 0 : i32
    return %c0_i32, %c0_i32_0 : i32, i32
  }
  func.func @transform_8(%arg0: i32) -> (i32, i32) {
    %c0_i32 = arith.constant 0 : i32
    %c0_i32_0 = arith.constant 0 : i32
    %c0_i32_1 = arith.constant 0 : i32
    return %c0_i32, %c0_i32_0 : i32, i32
  }
}

</mosaic_0001>

<bundles_post_ra>
// kernel: apt_predictor.1
= control target key start
LH: loop header
LB: loop body
LE: loop exit
PB: predicated region body
PF: predicated region fallthrough
CT: control target
= control target key end

     0   :  { %v195_v0 = vmov 0.0   ;;  %vm196_vm0 = vmmov 0   ;;  %vm65_vm1 = vcmask 261120   ;;  %vm112_vm3 = vcmask 130048   ;;  %s275_s2 = inlined_call_operand.vmem [shape: bf16[32,16], index: 2, kind: input, shape index: {}]   ;;  %s276_s0 = inlined_call_operand.vmem [shape: f32[8,32], index: 0, kind: input, shape index: {}]   ;;  %s277_s1 = inlined_call_operand.vmem [shape: f32[1,32], index: 1, kind: input, shape index: {}]   ;;  %s278_s7 = inlined_call_operand.<no memory space> [shape: f32[1,1], index: 7, kind: input, shape index: {}]   ;;  %s279_s3 = inlined_call_operand.vmem [shape: f32[1,16], index: 3, kind: input, shape index: {}]   ;;  %s280_s4 = inlined_call_operand.vmem [shape: f32[1,16], index: 4, kind: input, shape index: {}]   ;;  %s281_s6 = inlined_call_operand.vmem [shape: f32[1,16], index: 6, kind: input, shape index: {}]   ;;  %s282_s5 = inlined_call_operand.vmem [shape: f32[1,16], index: 5, kind: input, shape index: {}]   ;;  %s283_s8 = inlined_call_operand.vmem [shape: f32[8,1], index: 8, kind: output, shape index: {}]  }
   0x1   :  { %181 = vmatprep.subr.bf16.mxu0 %v195_v0  ;;  %v191_v1 = vld [vmem:[%s275_s2 + $0x8] sm:$0xff]   ;;  %185 = vmatprep.mubr.msk.bf16.mxu0 %vm196_vm0, %v195_v0  ;;  %v192_v2 = vld [vmem:[%s275_s2] sm:$0xff]   ;;  %v13_v7 = vstv %s278_s7  ;;  %v150_v37 = vlaneseq  ;;  %vm144_vm4 = vcmask 122880   ;;  %vm167_vm5 = vcmask 7168  }
   0x2   :  { %182 = vmatpush3.bf16.msra.mxu0 %v191_v1  ;;  %v32_v3 = vld [vmem:[%s276_s0] sm:$0xff]  ;;  %14 = vst [vmem:[#allocation2] sm:$0x1] %v13_v7 }
   0x3   :  { %v173_v4 = vld [vmem:[%s277_s1] ss:$0 sm:$0xff]  ;;  %183 = vmatprep.subr.bf16.mxu0 %v195_v0  ;;  %v151_v38 = vshrl.u32 %v150_v37, 7 }
   0x4   :  { %v40_v5 = vmul.f32 %v173_v4, %v32_v3  ;;  %v174_v8 = vld [vmem:[%s279_s3] ss:$0 sm:$0xff] }
   0x5   :  { %v128_v39 = vld [vmem:[%s280_s4] sm:$0x1]  ;;  %v152_v43 = vsub.s32 0, %v151_v38 }
   0x6   :  { %v41_v6 = vpack.c.bf16 %v40_v5, %v40_v5  ;;  %184 = vmatpush3.bf16.msra.mxu0 %v192_v2  ;;  %v130_v41 = vld [vmem:[%s281_s6] sm:$0x1] }
   0x7   :  { %v129_v44 = vld [vmem:[%s282_s5] sm:$0x1] }
   0x9   :  { %186 = vmatmul.mubr.msk.bf16.vlgmr.msra.gmra.mxu0 %vm65_vm1, %v41_v6  ;;  %v131_v53 = vld [vmem:[#allocation2] sm:$0x1] }
  0xc9   :  { %v103_v9 = vpop.f32.mrf.mxu0 }
  0xca   :  { %v104_v10 = vadd.f32 %v174_v8, %v103_v9 }
  0xcb   :  { %v187_v11 = vpop.f32.mrf.mxu0 }
  0xcc   :  { %vm109_vm2 = vcmp.ge.f32.partialorder %v104_v10, 0.0  ;;  %v110_v12 = vmul.f32 0.01, %v104_v10 }
  0xcd   :  { %v106_v13 = vpop.f32.mrf.mxu0 }
  0xce   :  { %v111_v14 = vsel %vm109_vm2, %v104_v10, %v110_v12 }
  0xcf   :  { %v113_v15 = vsel %vm112_vm3, %v111_v14, 0.0  ;;  %v120_v16 = vmul.f32 %v111_v14, %v111_v14  ;;  %v188_v17 = vpop.f32.mrf.mxu0 }
  0xd0   :  { %v114_v18 = vrot.slane %v113_v15, 4 }
  0xd1   :  { %v121_v19 = vsel %vm112_vm3, %v120_v16, 0.0 }
  0xd2   :  { %v115_v20 = vadd.f32 %v114_v18, %v113_v15  ;;  %v122_v21 = vrot.slane %v121_v19, 4 }
  0xd4   :  { %v116_v22 = vrot.slane %v115_v20, 2  ;;  %v123_v23 = vadd.f32 %v122_v21, %v121_v19 }
  0xd6   :  { %v124_v24 = vrot.slane %v123_v23, 2  ;;  %v117_v25 = vadd.f32 %v116_v22, %v115_v20 }
  0xd8   :  { %v125_v26 = vadd.f32 %v124_v24, %v123_v23  ;;  %v118_v27 = vrot.slane %v117_v25, 1 }
  0xda   :  { %v126_v28 = vrot.slane %v125_v26, 1  ;;  %v119_v29 = vadd.f32 %v118_v27, %v117_v25 }
  0xdc   :  { %v127_v30 = vadd.f32 %v126_v28, %v125_v26  ;;  %v132_v31 = vmul.f32 0.125, %v119_v29 }
  0xde   :  { %v133_v32 = vmul.f32 0.125, %v127_v30  ;;  %v134_v33 = vmul.f32 %v132_v31, %v132_v31 }
  0xe0   :  { %v135_v34 = vsub.f32 %v133_v32, %v134_v33 }
  0xe2   :  { %v136_v35 = vmax.f32 %v135_v34, 0.0 }
  0xe4   :  { %v137_v36 = vadd.f32 1e-05, %v136_v35 }
  0xe6   :  { %193 = vrsqrt.f32 %v137_v36 }
  0xf3   :  { %v194_v40 = vpop.eup %193 }
  0xf4   :  { %v139_v42 = vmul.f32 %v194_v40, %v128_v39 }
  0xf6   :  { %v140_v45 = vmul.f32 %v139_v42, %v132_v31  ;;  %v142_v46 = vmul.f32 %v139_v42, %v130_v41 }
  0xf8   :  { %v141_v47 = vsub.f32 %v129_v44, %v140_v45  ;;  %v153_v48 = vrot.slane %v142_v46, %v152_v43 }
  0xfa   :  { %v143_v49 = vmul.f32 %v141_v47, %v130_v41  ;;  %v155_v51 = vmul.f32 %v153_v48, %v111_v14 }
  0xfc   :  { %v145_v50 = vsel %vm144_vm4, %v143_v49, 0.0  ;;  %v156_v52 = vsel %vm112_vm3, %v155_v51, 0.0 }
  0xfd   :  { %146 = vadd.xlane.f32.xlu0 %v145_v50 }
 0x101   :  { %157 = vadd.xlane.f32.xlu0 %v156_v52 }
 0x186   :  { %v147_v54 = vpop.xlane.xlu0 %146 }
 0x187   :  { %v148_v55 = vadd.f32 %v147_v54, %v131_v53 }
 0x189   :  { %v162_v56 = vrot.slane %v148_v55, %v152_v43 }
 0x18a   :  { %v158_v57 = vpop.xlane.xlu0 %157 }
 0x18b   :  { %v163_v58 = vadd.f32 %v162_v56, %v158_v57 }
 0x18d   :  { %vm164_vm6 = vcmp.ge.f32.partialorder %v163_v58, 0.0  ;;  %v165_v59 = vmul.f32 0.01, %v163_v58 }
 0x18f   :  { %v166_v60 = vsel %vm164_vm6, %v163_v58, %v165_v59 }
 0x190   :  { %168 = vst.msk [vmem:[%s283_s8] sm:$0xff] %vm167_vm5, %v166_v60 }

</bundles_post_ra>
